<compile_context>
chip_gen: v7x
topology: tpu7x:2x2x1
jax: 0.10.0
libtpu: 0.0.40
codegen_flags: <defaults>
</compile_context>

<pallas_src>
import numpy as np
import jax
import jax.numpy as jnp
from jax.experimental import pallas as pl
from jax.experimental.pallas import tpu as pltpu


def _round_up(x: int, m: int) -> int:
    return ((x + m - 1) // m) * m


def _critic_kernel(state_ref, action_ref, w1s_ref, w1a_ref, b1_ref,
                   w2_ref, b2_ref, w3_ref, b3_ref, out_ref):
    # Layer 1: fused concat — the (S+A, 256) matmul is split into two MXU
    # matmuls over the separately streamed state / action tiles.
    h1 = (jnp.dot(state_ref[...], w1s_ref[...], preferred_element_type=jnp.float32)
          + jnp.dot(action_ref[...], w1a_ref[...], preferred_element_type=jnp.float32)
          + b1_ref[...])
    h1 = jnp.maximum(h1, 0.0)

    # Layer 2: 256x256 MXU matmul in the compute dtype, f32 accumulation.
    h2 = jnp.dot(h1.astype(w2_ref.dtype), w2_ref[...],
                 preferred_element_type=jnp.float32) + b2_ref[...]
    h2 = jnp.maximum(h2, 0.0)

    # Layer 3 (256 -> 1): an N=1 matmul would waste the MXU, so use the VPU
    # (elementwise mul) + XLU (cross-lane sum), which are otherwise idle here.
    q = jnp.sum(h2 * w3_ref[...].astype(jnp.float32), axis=-1, keepdims=True)
    q = q + b3_ref[0]                       # SMEM scalar bias
    out_ref[...] = q.astype(out_ref.dtype)


def critic_forward(state, action, params, *, block_b=512,
                   compute_dtype=jnp.float32):
    """state: (B, S), action: (B, A)  ->  q: (B, 1) float32."""
    w1, b1, w2, b2, w3, b3 = params
    B, S = state.shape
    A = action.shape[1]
    H = w2.shape[0]

    # ---- batch tiling (sublane-aligned) + zero padding of the last tile ----
    tb = min(_round_up(block_b, 8), _round_up(B, 8))
    b_pad = _round_up(B, tb)
    if b_pad != B:
        pad = b_pad - B
        state = jnp.pad(state, ((0, pad), (0, 0)))
        action = jnp.pad(action, ((0, pad), (0, 0)))
    num_tiles = b_pad // tb

    # ---- host-side weight prep: split w1, MXU-friendly compute dtype -------
    state_c = state.astype(compute_dtype)
    action_c = action.astype(compute_dtype)
    w1_s = w1[:S].astype(compute_dtype)                 # (S, H)
    w1_a = w1[S:].astype(compute_dtype)                 # (A, H)
    w2_c = w2.astype(compute_dtype)                     # (H, H)
    w3_row = w3.reshape(1, H).astype(compute_dtype)     # (1, H) for the VPU reduce
    b1_f = b1.reshape(1, H).astype(jnp.float32)
    b2_f = b2.reshape(1, H).astype(jnp.float32)
    b3_f = b3.reshape(1).astype(jnp.float32)            # SMEM scalar

    itemsize = np.dtype(compute_dtype).itemsize
    flops = 2 * b_pad * (S * H + A * H + H * H + H)
    bytes_accessed = (b_pad * (S + A) * itemsize            # streamed activations
                      + ((S + A) * H + H * H + H) * itemsize  # weights
                      + (2 * H + 1) * 4                      # biases
                      + b_pad * 4)                           # output

    def _weight_spec(shape):
        # Resident in VMEM: same block for every grid step -> DMA'd once.
        return pl.BlockSpec(shape, lambda i: (0, 0))

    out = pl.pallas_call(
        _critic_kernel,
        out_shape=jax.ShapeDtypeStruct((b_pad, 1), jnp.float32),
        grid=(num_tiles,),
        in_specs=[
            pl.BlockSpec((tb, S), lambda i: (i, 0)),     # state tile (streamed)
            pl.BlockSpec((tb, A), lambda i: (i, 0)),     # action tile (streamed)
            _weight_spec((S, H)),                        # w1_s
            _weight_spec((A, H)),                        # w1_a
            _weight_spec((1, H)),                        # b1
            _weight_spec((H, H)),                        # w2
            _weight_spec((1, H)),                        # b2
            _weight_spec((1, H)),                        # w3 (row)
            pl.BlockSpec(memory_space=pltpu.MemorySpace.SMEM),  # b3 scalar
        ],
        out_specs=pl.BlockSpec((tb, 1), lambda i: (i, 0)),
        compiler_params=pltpu.CompilerParams(
            dimension_semantics=("parallel",),           # shard grid across TCs (v7x)
        ),
        cost_estimate=pl.CostEstimate(
            flops=flops, transcendentals=0, bytes_accessed=bytes_accessed),
    )(state_c, action_c, w1_s, w1_a, b1_f, w2_c, b2_f, w3_row, b3_f)

    return out[:B]


def init_critic_params(key, state_dim, action_dim, hidden=256):
    """Deterministic synthetic init (shapes match the nn.Linear layers,
    weights stored as (in_features, out_features) so y = x @ W + b)."""
    k1, k2, k3, k4, k5, k6 = jax.random.split(key, 6)
    d_in = state_dim + action_dim

    def lin(kw, kb, fan_in, fan_out):
        bound = 1.0 / jnp.sqrt(fan_in)
        w = jax.random.uniform(kw, (fan_in, fan_out), jnp.float32, -bound, bound)
        b = jax.random.uniform(kb, (1, fan_out), jnp.float32, -bound, bound)
        return w, b

    w1, b1 = lin(k1, k2, d_in, hidden)
    w2, b2 = lin(k3, k4, hidden, hidden)
    w3, b3 = lin(k5, k6, hidden, 1)
    return (w1, b1, w2, b2, w3, b3)


def critic_reference(state, action, params):
    """Pure-JAX reference identical to the PyTorch forward."""
    w1, b1, w2, b2, w3, b3 = params
    sa = jnp.concatenate([state, action], axis=1)
    h1 = jnp.maximum(sa @ w1 + b1, 0.0)
    h2 = jnp.maximum(h1 @ w2 + b2, 0.0)
    return h2 @ w3 + b3


if __name__ == "__main__":
    key = jax.random.PRNGKey(0)
    k_s, k_a, k_p, k_s2, k_a2 = jax.random.split(key, 5)

    state_dim, action_dim = 24, 8
    params = init_critic_params(k_p, state_dim, action_dim)

    # Small case (module's toy sizes).
    batch = 2
    state = jax.random.normal(k_s, (batch, state_dim), jnp.float32)
    action = jax.random.normal(k_a, (batch, action_dim), jnp.float32)
    q = jax.block_until_ready(critic_forward(state, action, params))
    q_ref = critic_reference(state, action, params)
    assert q.shape == (batch, 1)
    assert jnp.allclose(q, q_ref, atol=1e-3, rtol=1e-3)

    # Multi-tile grid + last-tile padding path (B not a multiple of the tile).
    batch2 = 50
    state2 = jax.random.normal(k_s2, (batch2, state_dim), jnp.float32)
    action2 = jax.random.normal(k_a2, (batch2, action_dim), jnp.float32)
    q2 = jax.block_until_ready(critic_forward(state2, action2, params, block_b=16))
    q2_ref = critic_reference(state2, action2, params)
    assert q2.shape == (batch2, 1)
    assert jnp.allclose(q2, q2_ref, atol=1e-3, rtol=1e-3)

    # bf16 weights/activations with f32 accumulation (v5e/v6e/v7x MXU fast path).
    q3 = jax.block_until_ready(
        critic_forward(state2, action2, params, compute_dtype=jnp.bfloat16))
    assert jnp.allclose(q3, q2_ref, atol=5e-2, rtol=5e-2)

    print("KERNEL_OK")
</pallas_src>

<mosaic_0001>
module attributes {stable_mosaic.version = 11 : i64} {
  func.func @_critic_kernel(%arg0: i32, %arg1: memref<8x24xf32, #tpu.memory_space<vmem>>, %arg2: memref<8x8xf32, #tpu.memory_space<vmem>>, %arg3: memref<24x256xf32, #tpu.memory_space<vmem>>, %arg4: memref<8x256xf32, #tpu.memory_space<vmem>>, %arg5: memref<1x256xf32, #tpu.memory_space<vmem>>, %arg6: memref<256x256xf32, #tpu.memory_space<vmem>>, %arg7: memref<1x256xf32, #tpu.memory_space<vmem>>, %arg8: memref<1x256xf32, #tpu.memory_space<vmem>>, %arg9: memref<1xf32, #tpu.memory_space<smem>>, %arg10: memref<8x1xf32, #tpu.memory_space<vmem>>) attributes {dimension_semantics = [#tpu.dimension_semantics<parallel>], iteration_bounds = array<i64: 1>, scalar_prefetch = 0 : i64, scratch_operands = 0 : i64, tpu.core_type = #tpu.core_type<tc>, window_params = [{transform_indices = @transform_0, window_bounds = array<i64: 8, 24>}, {transform_indices = @transform_1, window_bounds = array<i64: 8, 8>}, {pipeline_mode = #tpu.pipeline_mode<synchronous>, transform_indices = @transform_2, window_bounds = array<i64: 24, 256>}, {pipeline_mode = #tpu.pipeline_mode<synchronous>, transform_indices = @transform_3, window_bounds = array<i64: 8, 256>}, {pipeline_mode = #tpu.pipeline_mode<synchronous>, transform_indices = @transform_4, window_bounds = array<i64: 1, 256>}, {pipeline_mode = #tpu.pipeline_mode<synchronous>, transform_indices = @transform_5, window_bounds = array<i64: 256, 256>}, {pipeline_mode = #tpu.pipeline_mode<synchronous>, transform_indices = @transform_6, window_bounds = array<i64: 1, 256>}, {pipeline_mode = #tpu.pipeline_mode<synchronous>, transform_indices = @transform_7, window_bounds = array<i64: 1, 256>}, {transform_indices = @transform_8, window_bounds = array<i64: 1>}, {transform_indices = @transform_9, window_bounds = array<i64: 8, 1>}]} {
    %c0 = arith.constant 0 : index
    %c0_0 = arith.constant 0 : index
    %0 = vector.load %arg1[%c0, %c0_0] : memref<8x24xf32, #tpu.memory_space<vmem>>, vector<8x24xf32>
    %c0_1 = arith.constant 0 : index
    %c0_2 = arith.constant 0 : index
    %1 = vector.load %arg3[%c0_1, %c0_2] : memref<24x256xf32, #tpu.memory_space<vmem>>, vector<24x256xf32>
    %cst = arith.constant dense<0.000000e+00> : vector<8x256xf32>
    %2 = tpu.matmul %0, %1, %cst {dimension_numbers = #tpu.dot_dimension_numbers<[1], [0], [0], [1], [0, 0, 1, 1], [], []>} : vector<8x24xf32>, vector<24x256xf32>, vector<8x256xf32> -> vector<8x256xf32>
    %c0_3 = arith.constant 0 : index
    %c0_4 = arith.constant 0 : index
    %3 = vector.load %arg2[%c0_3, %c0_4] : memref<8x8xf32, #tpu.memory_space<vmem>>, vector<8x8xf32>
    %c0_5 = arith.constant 0 : index
    %c0_6 = arith.constant 0 : index
    %4 = vector.load %arg4[%c0_5, %c0_6] : memref<8x256xf32, #tpu.memory_space<vmem>>, vector<8x256xf32>
    %cst_7 = arith.constant dense<0.000000e+00> : vector<8x256xf32>
    %5 = tpu.matmul %3, %4, %cst_7 {dimension_numbers = #tpu.dot_dimension_numbers<[1], [0], [0], [1], [0, 0, 1, 1], [], []>} : vector<8x8xf32>, vector<8x256xf32>, vector<8x256xf32> -> vector<8x256xf32>
    %6 = arith.addf %2, %5 : vector<8x256xf32>
    %c0_8 = arith.constant 0 : index
    %c0_9 = arith.constant 0 : index
    %7 = vector.load %arg5[%c0_8, %c0_9] : memref<1x256xf32, #tpu.memory_space<vmem>>, vector<1x256xf32>
    %8 = vector.broadcast %7 : vector<1x256xf32> to vector<8x256xf32>
    %9 = arith.addf %6, %8 : vector<8x256xf32>
    %cst_10 = arith.constant 0.000000e+00 : f32
    %10 = vector.broadcast %cst_10 : f32 to vector<8x256xf32>
    %11 = arith.maximumf %9, %10 : vector<8x256xf32>
    %c0_11 = arith.constant 0 : index
    %c0_12 = arith.constant 0 : index
    %12 = vector.load %arg6[%c0_11, %c0_12] : memref<256x256xf32, #tpu.memory_space<vmem>>, vector<256x256xf32>
    %cst_13 = arith.constant dense<0.000000e+00> : vector<8x256xf32>
    %13 = tpu.matmul %11, %12, %cst_13 {dimension_numbers = #tpu.dot_dimension_numbers<[1], [0], [0], [1], [0, 0, 1, 1], [], []>} : vector<8x256xf32>, vector<256x256xf32>, vector<8x256xf32> -> vector<8x256xf32>
    %c0_14 = arith.constant 0 : index
    %c0_15 = arith.constant 0 : index
    %14 = vector.load %arg7[%c0_14, %c0_15] : memref<1x256xf32, #tpu.memory_space<vmem>>, vector<1x256xf32>
    %15 = vector.broadcast %14 : vector<1x256xf32> to vector<8x256xf32>
    %16 = arith.addf %13, %15 : vector<8x256xf32>
    %cst_16 = arith.constant 0.000000e+00 : f32
    %17 = vector.broadcast %cst_16 : f32 to vector<8x256xf32>
    %18 = arith.maximumf %16, %17 : vector<8x256xf32>
    %c0_17 = arith.constant 0 : index
    %c0_18 = arith.constant 0 : index
    %19 = vector.load %arg8[%c0_17, %c0_18] : memref<1x256xf32, #tpu.memory_space<vmem>>, vector<1x256xf32>
    %20 = vector.broadcast %19 : vector<1x256xf32> to vector<8x256xf32>
    %21 = arith.mulf %18, %20 : vector<8x256xf32>
    %cst_19 = arith.constant dense<0.000000e+00> : vector<8xf32>
    %22 = vector.multi_reduction <add>, %21, %cst_19 [1] : vector<8x256xf32> to vector<8xf32>
    %23 = vector.shape_cast %22 : vector<8xf32> to vector<8x1xf32>
    %c0_20 = arith.constant 0 : index
    %24 = memref.load %arg9[%c0_20] : memref<1xf32, #tpu.memory_space<smem>>
    %25 = vector.broadcast %24 : f32 to vector<8x1xf32>
    %26 = arith.addf %23, %25 : vector<8x1xf32>
    %c0_21 = arith.constant 0 : index
    %c0_22 = arith.constant 0 : index
    %27 = vector.load %arg10[%c0_21, %c0_22] : memref<8x1xf32, #tpu.memory_space<vmem>>, vector<8x1xf32>
    tpu.vector_store %arg10[%c0_21, %c0_22], %26 {strides = array<i32>} : memref<8x1xf32, #tpu.memory_space<vmem>>, vector<8x1xf32>,
    return
  }
  func.func @transform_0(%arg0: i32) -> (i32, i32) {
    %c0_i32 = arith.constant 0 : i32
    %c0_i32_0 = arith.constant 0 : i32
    return %arg0, %c0_i32 : i32, i32
  }
  func.func @transform_1(%arg0: i32) -> (i32, i32) {
    %c0_i32 = arith.constant 0 : i32
    %c0_i32_0 = arith.constant 0 : i32
    return %arg0, %c0_i32 : i32, i32
  }
  func.func @transform_2(%arg0: i32) -> (i32, i32) {
    %c0_i32 = arith.constant 0 : i32
    %c0_i32_0 = arith.constant 0 : i32
    %c0_i32_1 = arith.constant 0 : i32
    return %c0_i32, %c0_i32_0 : i32, i32
  }
  func.func @transform_3(%arg0: i32) -> (i32, i32) {
    %c0_i32 = arith.constant 0 : i32
    %c0_i32_0 = arith.constant 0 : i32
    %c0_i32_1 = arith.constant 0 : i32
    return %c0_i32, %c0_i32_0 : i32, i32
  }
  func.func @transform_4(%arg0: i32) -> (i32, i32) {
    %c0_i32 = arith.constant 0 : i32
    %c0_i32_0 = arith.constant 0 : i32
    %c0_i32_1 = arith.constant 0 : i32
    return %c0_i32, %c0_i32_0 : i32, i32
  }
  func.func @transform_5(%arg0: i32) -> (i32, i32) {
    %c0_i32 = arith.constant 0 : i32
    %c0_i32_0 = arith.constant 0 : i32
    %c0_i32_1 = arith.constant 0 : i32
    return %c0_i32, %c0_i32_0 : i32, i32
  }
  func.func @transform_6(%arg0: i32) -> (i32, i32) {
    %c0_i32 = arith.constant 0 : i32
    %c0_i32_0 = arith.constant 0 : i32
    %c0_i32_1 = arith.constant 0 : i32
    return %c0_i32, %c0_i32_0 : i32, i32
  }
  func.func @transform_7(%arg0: i32) -> (i32, i32) {
    %c0_i32 = arith.constant 0 : i32
    %c0_i32_0 = arith.constant 0 : i32
    %c0_i32_1 = arith.constant 0 : i32
    return %c0_i32, %c0_i32_0 : i32, i32
  }
  func.func @transform_8(%arg0: i32) -> i32 {
    %c0_i32 = arith.constant 0 : i32
    %c0_i32_0 = arith.constant 0 : i32
    return %c0_i32 : i32
  }
  func.func @transform_9(%arg0: i32) -> (i32, i32) {
    %c0_i32 = arith.constant 0 : i32
    %c0_i32_0 = arith.constant 0 : i32
    return %arg0, %c0_i32 : i32, i32
  }
}

</mosaic_0001>

<bundles_post_ra>
// kernel: tpu_custom_call.1
= control target key start
LH: loop header
LB: loop body
LE: loop exit
PB: predicated region body
PF: predicated region fallthrough
CT: control target
= control target key end

     0   :  { %15 = vsyncpa [#allocation4], 0  ;;  %s785_s0 = inlined_call_operand.hbm [shape: f32[8,24], index: 0, kind: input, shape index: {}]   ;;  %s786_s1 = inlined_call_operand.hbm [shape: f32[8,8], index: 1, kind: input, shape index: {}]   ;;  %s787_s2 = inlined_call_operand.hbm [shape: f32[24,256], index: 2, kind: input, shape index: {}]   ;;  %s788_s3 = inlined_call_operand.hbm [shape: f32[8,256], index: 3, kind: input, shape index: {}]   ;;  %s789_s4 = inlined_call_operand.vmem [shape: f32[1,256], index: 4, kind: input, shape index: {}]   ;;  %s790_s5 = inlined_call_operand.hbm [shape: f32[256,256], index: 5, kind: input, shape index: {}]   ;;  %s791_s6 = inlined_call_operand.vmem [shape: f32[1,256], index: 6, kind: input, shape index: {}]   ;;  %s792_s7 = inlined_call_operand.vmem [shape: f32[1,256], index: 7, kind: input, shape index: {}]   ;;  %s793_s8 = inlined_call_operand.<no memory space> [shape: f32[1], index: 8, kind: input, shape index: {}]   ;;  %s794_s9 = inlined_call_operand.vmem [shape: f32[8,1], index: 9, kind: output, shape index: {}]  }
   0x1   :  { %16 = vsyncpa [#allocation6], 0 }
   0x2   :  { %17 = vsyncpa [#allocation9], 0  ;;  %s645_s30 = smov [#allocation5]   ;;  %s646_s11 = smov [#allocation8]  }
   0x3   :  { %s34_s10 = sshll.u32 %s645_s30, 4  ;;  %s56_s12 = sshll.u32 %s646_s11, 4  ;;  %s35_s10 = int_to_ptr.vmem [resolvable:$true] %s34_s10  ;;  %s57_s12 = int_to_ptr.vmem [resolvable:$true] %s56_s12 }
   0x4   :  { %s529_s15 = scalar_lea.hbm %s786_s1, 128 }
   0x5   :  { %p530_p0 = scmp.ne.s32.totalorder %s786_s1, %s529_s15  ;;  %p533_p1 = scmp.lt.u32.totalorder %s529_s15, %s786_s1 }
   0x7   :  { %p535_p2 = pnand %p533_p1, %p530_p0 }
   0x9   :  { %538 = shalt.err (!%p535_p2)
}
   0xa   :  { %s539_s20 = scalar_lea.vmem %s35_s10, 128  ;;  %p544_p4 = scmp.lt.s32.totalorder %s35_s10, %s35_s10 }
   0xb   :  { %p540_p3 = scmp.ne.s32.totalorder %s35_s10, %s539_s20  ;;  %p545_p5 = scmp.lt.s32.totalorder %s539_s20, %s539_s20 }
   0xd   :  { %p546_p6 = por %p545_p5, %p544_p4 }
   0xf   :  { %p547_p7 = pnand %p546_p6, %p540_p3 }
  0x11   :  { %550 = shalt.err (!%p547_p7)
}
  0x12   :  { %37 = dma.hbm_to_vmem [thread:$0]  %s786_s1, 128, %s35_s10, [#allocation6]  }
  0x13   :  { %s551_s25 = scalar_lea.hbm %s788_s3, 256 }
  0x14   :  { %p552_p8 = scmp.ne.s32.totalorder %s788_s3, %s551_s25  ;;  %p555_p9 = scmp.lt.u32.totalorder %s551_s25, %s788_s3 }
  0x16   :  { %p557_p10 = pnand %p555_p9, %p552_p8 }
  0x18   :  { %560 = shalt.err (!%p557_p10)
}
  0x19   :  { %s561_s30 = scalar_lea.vmem %s57_s12, 256  ;;  %p566_p12 = scmp.lt.s32.totalorder %s57_s12, %s57_s12 }
  0x1a   :  { %p562_p11 = scmp.ne.s32.totalorder %s57_s12, %s561_s30  ;;  %p567_p13 = scmp.lt.s32.totalorder %s561_s30, %s561_s30 }
  0x1c   :  { %p568_p0 = por %p567_p13, %p566_p12 }
  0x1e   :  { %p569_p1 = pnand %p568_p0, %p562_p11 }
  0x20   :  { %572 = shalt.err (!%p569_p1)
}
  0x21   :  { %59 = dma.hbm_to_vmem [thread:$0]  %s788_s3, 256, %s57_s12, [#allocation9]  }
  0x22   :  { %s647_s11 = smov [#allocation3]   ;;  %s648_s14 = smov [#allocation7]  }
  0x23   :  { %s24_s13 = sshll.u32 %s647_s11, 4  ;;  %s43_s15 = sshll.u32 %s648_s14, 4  ;;  %s25_s13 = int_to_ptr.vmem [resolvable:$true] %s24_s13  ;;  %s727_s15 = int_to_ptr.vmem [resolvable:$true] %s43_s15 }
  0x24   :  { %s573_s18 = scalar_lea.hbm %s785_s0, 128 }
  0x25   :  { %p574_p2 = scmp.ne.s32.totalorder %s785_s0, %s573_s18  ;;  %p577_p3 = scmp.lt.u32.totalorder %s573_s18, %s785_s0 }
  0x27   :  { %p579_p4 = pnand %p577_p3, %p574_p2 }
  0x29   :  { %582 = shalt.err (!%p579_p4)
}
  0x2a   :  { %s583_s3 = scalar_lea.vmem %s25_s13, 128  ;;  %p588_p6 = scmp.lt.s32.totalorder %s25_s13, %s25_s13 }
  0x2b   :  { %p584_p5 = scmp.ne.s32.totalorder %s25_s13, %s583_s3  ;;  %p589_p7 = scmp.lt.s32.totalorder %s583_s3, %s583_s3 }
  0x2d   :  { %p590_p8 = por %p589_p7, %p588_p6 }
  0x2f   :  { %p591_p9 = pnand %p590_p8, %p584_p5 }
  0x31   :  { %594 = shalt.err (!%p591_p9)
}
  0x32   :  { %27 = dma.hbm_to_vmem [thread:$0]  %s785_s0, 128, %s25_s13, [#allocation4]  }
  0x33   :  { %s595_s26 = scalar_lea.hbm %s787_s2, 768 }
  0x34   :  { %p596_p10 = scmp.ne.s32.totalorder %s787_s2, %s595_s26  ;;  %p599_p11 = scmp.lt.u32.totalorder %s595_s26, %s787_s2 }
  0x36   :  { %p601_p12 = pnand %p599_p11, %p596_p10 }
  0x38   :  { %604 = shalt.err (!%p601_p12)
}
  0x39   :  { %s605_s1 = scalar_lea.vmem %s727_s15, 768  ;;  %p610_p0 = scmp.lt.s32.totalorder %s727_s15, %s727_s15 }
  0x3a   :  { %p606_p13 = scmp.ne.s32.totalorder %s727_s15, %s605_s1  ;;  %p611_p1 = scmp.lt.s32.totalorder %s605_s1, %s605_s1 }
  0x3c   :  { %p612_p2 = por %p611_p1, %p610_p0 }
  0x3e   :  { %p613_p3 = pnand %p612_p2, %p606_p13 }
  0x40   :  { %616 = shalt.err (!%p613_p3)
}
  0x41   :  { %s649_s0 = smov 256   ;;  %s650_s10 = smov 16  }
  0x42   :  { %49 = dma.hbm_to_vmem [thread:$0]  %s787_s2, 768, %s727_s15, [#allocation6], %s649_s0, %s649_s0, %s650_s10  }
  0x43   :  { %s651_s14 = smov [#allocation10]   ;;  %s617_s19 = scalar_lea.hbm %s790_s5, 8192 }
  0x44   :  { %s67_s16 = sshll.u32 %s651_s14, 4  ;;  %p618_p4 = scmp.ne.s32.totalorder %s790_s5, %s617_s19  ;;  %s68_s16 = int_to_ptr.vmem [resolvable:$true] %s67_s16 }
  0x45   :  { %p621_p5 = scmp.lt.u32.totalorder %s617_s19, %s790_s5 }
  0x47   :  { %p623_p6 = pnand %p621_p5, %p618_p4 }
  0x49   :  { %626 = shalt.err (!%p623_p6)
}
  0x4a   :  { %s627_s12 = scalar_lea.vmem %s68_s16, 8192  ;;  %p632_p8 = scmp.lt.s32.totalorder %s68_s16, %s68_s16 }
  0x4b   :  { %p628_p7 = scmp.ne.s32.totalorder %s68_s16, %s627_s12  ;;  %p633_p9 = scmp.lt.s32.totalorder %s627_s12, %s627_s12 }
  0x4d   :  { %p634_p10 = por %p633_p9, %p632_p8 }
  0x4f   :  { %p635_p11 = pnand %p634_p10, %p628_p7 }
  0x51   :  { %638 = shalt.err (!%p635_p11)
}
  0x52   :  { %73 = dma.hbm_to_vmem [thread:$0]  %s790_s5, 8192, %s68_s16, [#allocation9], %s649_s0, %s649_s0, %s650_s10  }
  0x53   :  { %639 = dma.done.wait [#allocation4], 128  }
  0x54   :  { %640 = vsyncadd [#allocation4], 4294967168 }
  0x55   :  { %641 = dma.done.wait [#allocation6], 896  }
  0x56   :  { %642 = vsyncadd [#allocation6], 4294966400 }
  0x57   :  { %643 = dma.done.wait [#allocation9], 8448  }
  0x58   :  { %644 = vsyncadd [#allocation9], 4294958848  ;;  %v652_v0 = vmov 0.0   ;;  %v104_v1 = vld [vmem:[#allocation8 + $0x8] sm:$0xff]  ;;  %v103_v2 = vld [vmem:[#allocation8] sm:$0xff]  ;;  %vm105_vm0 = vcmask 64512  }
  0x59   :  { %173 = vmatprep.mubr.f32.mxu0 %v652_v0  ;;  %v102_v3 = vld [vmem:[#allocation5] sm:$0xff]  ;;  %109 = vmatprep.subr.mxu0 %v104_v1  ;;  %v97_v4 = vld [vmem:[#allocation7 + $0x8] sm:$0xff]  ;;  %v96_v6 = vld [vmem:[#allocation7] sm:$0xff]  ;;  %vm180_vm1 = vcmask 195584   ;;  %vm440_vm2 = vcmask 7168  }
  0x5a   :  { %v99_v5 = vld [vmem:[#allocation7 + $0x18] sm:$0xff]  ;;  %110 = vmatpush1.msra.mxu0 %v103_v2  ;;  %v98_v8 = vld [vmem:[#allocation7 + $0x10] sm:$0xff]  ;;  %v101_v10 = vld [vmem:[#allocation7 + $0x28] sm:$0xff] }
  0x5b   :  { %v451_v7 = vpack.c.bf16 %v99_v5, %v97_v4  ;;  %449 = vmatmul.mubr.msk.f32.vlgmr.msra.gmra.mrb[0].mxu0 %vm105_vm0, %v102_v3  ;;  %v453_v9 = vpack.c.bf16 %v98_v8, %v96_v6  ;;  %v272_v11 = vld [vmem:[#allocation10 + $0x8] sm:$0xff]  ;;  %v274_v12 = vld [vmem:[#allocation10 + $0x18] sm:$0xff]  ;;  %v271_v14 = vld [vmem:[#allocation10] sm:$0xff] }
  0x5c   :  { %248 = vmatprep.mubr.f32.mxu0 %v652_v0  ;;  %v455_v13 = vpack.c.bf16 %v274_v12, %v272_v11  ;;  %v273_v15 = vld [vmem:[#allocation10 + $0x10] sm:$0xff]  ;;  %v276_v16 = vld [vmem:[#allocation10 + $0x28] sm:$0xff]  ;;  %v278_v18 = vld [vmem:[#allocation10 + $0x38] sm:$0xff] }
  0x5d   :  { %452 = vmatprep.subr.bf16.mxu0 %v451_v7  ;;  %v457_v17 = vpack.c.bf16 %v273_v15, %v271_v14  ;;  %v275_v19 = vld [vmem:[#allocation10 + $0x20] sm:$0xff]  ;;  %v277_v20 = vld [vmem:[#allocation10 + $0x30] sm:$0xff]  ;;  %v459_v22 = vpack.c.bf16 %v278_v18, %v276_v16  ;;  %v280_v23 = vld [vmem:[#allocation10 + $0x48] sm:$0xff] }
  0x5e   :  { %454 = vmatpush1.bf16.msra.mxu0 %v453_v9  ;;  %v100_v21 = vld [vmem:[#allocation7 + $0x20] sm:$0xff]  ;;  %456 = vmatprep.subr.bf16.mxu1 %v455_v13  ;;  %v282_v24 = vld [vmem:[#allocation10 + $0x58] sm:$0xff]  ;;  %v461_v25 = vpack.c.bf16 %v277_v20, %v275_v19  ;;  %v95_v26 = vld [vmem:[#allocation3] sm:$0xff] }
  0x5f   :  { %188 = vmatprep.subr.mxu0 %v101_v10  ;;  %458 = vmatpush1.bf16.msra.mxu1 %v457_v17  ;;  %v463_v27 = vpack.c.bf16 %v282_v24, %v280_v23  ;;  %v279_v28 = vld [vmem:[#allocation10 + $0x40] sm:$0xff]  ;;  %v281_v29 = vld [vmem:[#allocation10 + $0x50] sm:$0xff]  ;;  %v284_v30 = vld [vmem:[#allocation10 + $0x68] sm:$0xff] }
  0x60   :  { %460 = vmatprep.subr.bf16.mxu1 %v459_v22  ;;  %v286_v31 = vld [vmem:[#allocation10 + $0x78] sm:$0xff]  ;;  %v465_v32 = vpack.c.bf16 %v281_v29, %v279_v28  ;;  %v283_v34 = vld [vmem:[#allocation10 + $0x60] sm:$0xff]  ;;  %v285_v35 = vld [vmem:[#allocation10 + $0x70] sm:$0xff] }
  0x61   :  { %v467_v33 = vpack.c.bf16 %v286_v31, %v284_v30  ;;  %v288_v36 = vld [vmem:[#allocation10 + $0x88] sm:$0xff]  ;;  %v290_v37 = vld [vmem:[#allocation10 + $0x98] sm:$0xff]  ;;  %v469_v38 = vpack.c.bf16 %v285_v35, %v283_v34  ;;  %v287_v40 = vld [vmem:[#allocation10 + $0x80] sm:$0xff] }
  0x62   :  { %189 = vmatpush1.msra.mxu0 %v100_v21  ;;  %v471_v39 = vpack.c.bf16 %v290_v37, %v288_v36  ;;  %v289_v41 = vld [vmem:[#allocation10 + $0x90] sm:$0xff]  ;;  %v292_v42 = vld [vmem:[#allocation10 + $0xa8] sm:$0xff]  ;;  %v294_v43 = vld [vmem:[#allocation10 + $0xb8] sm:$0xff] }
  0x63   :  { %450 = vmatmul.mubr.msk.f32.vlgmr.msra.gmra.mrb[0].mxu0 %vm180_vm1, %v95_v26  ;;  %462 = vmatpush1.bf16.msra.mxu1 %v461_v25  ;;  %v473_v44 = vpack.c.bf16 %v289_v41, %v287_v40  ;;  %v475_v45 = vpack.c.bf16 %v294_v43, %v292_v42  ;;  %v291_v46 = vld [vmem:[#allocation10 + $0xa0] sm:$0xff]  ;;  %v293_v47 = vld [vmem:[#allocation10 + $0xb0] sm:$0xff]  ;;  %v296_v48 = vld [vmem:[#allocation10 + $0xc8] sm:$0xff] }
  0x64   :  { %464 = vmatprep.subr.bf16.mxu1 %v463_v27  ;;  %v298_v49 = vld [vmem:[#allocation10 + $0xd8] sm:$0xff]  ;;  %v477_v50 = vpack.c.bf16 %v293_v47, %v291_v46  ;;  %v295_v52 = vld [vmem:[#allocation10 + $0xc0] sm:$0xff]  ;;  %v297_v53 = vld [vmem:[#allocation10 + $0xd0] sm:$0xff] }
  0x65   :  { %v479_v51 = vpack.c.bf16 %v298_v49, %v296_v48  ;;  %v300_v54 = vld [vmem:[#allocation10 + $0xe8] sm:$0xff]  ;;  %v302_v55 = vld [vmem:[#allocation10 + $0xf8] sm:$0xff]  ;;  %v481_v56 = vpack.c.bf16 %v297_v53, %v295_v52  ;;  %v299_v58 = vld [vmem:[#allocation10 + $0xe0] sm:$0xff] }
  0x66   :  { %v483_v57 = vpack.c.bf16 %v302_v55, %v300_v54  ;;  %v301_v59 = vld [vmem:[#allocation10 + $0xf0] sm:$0xff]  ;;  %v304_v60 = vld [vmem:[#allocation10 + $0x108] sm:$0xff]  ;;  %v306_v61 = vld [vmem:[#allocation10 + $0x118] sm:$0xff] }
  0x67   :  { %466 = vmatpush1.bf16.msra.mxu1 %v465_v32  ;;  %v485_v62 = vpack.c.bf16 %v301_v59, %v299_v58  ;;  %v487_v63 = vpack.c.bf16 %v306_v61, %v304_v60  ;;  %v303_v0 = vld [vmem:[#allocation10 + $0x100] sm:$0xff]  ;;  %v305_v1 = vld [vmem:[#allocation10 + $0x110] sm:$0xff]  ;;  %v308_v2 = vld [vmem:[#allocation10 + $0x128] sm:$0xff] }
  0x68   :  { %468 = vmatprep.subr.bf16.mxu1 %v467_v33  ;;  %v310_v3 = vld [vmem:[#allocation10 + $0x138] sm:$0xff]  ;;  %v489_v4 = vpack.c.bf16 %v305_v1, %v303_v0  ;;  %v307_v6 = vld [vmem:[#allocation10 + $0x120] sm:$0xff]  ;;  %v309_v7 = vld [vmem:[#allocation10 + $0x130] sm:$0xff] }
  0x69   :  { %v491_v5 = vpack.c.bf16 %v310_v3, %v308_v2  ;;  %v312_v8 = vld [vmem:[#allocation10 + $0x148] sm:$0xff]  ;;  %v314_v9 = vld [vmem:[#allocation10 + $0x158] sm:$0xff]  ;;  %v493_v10 = vpack.c.bf16 %v309_v7, %v307_v6  ;;  %v311_v12 = vld [vmem:[#allocation10 + $0x140] sm:$0xff] }
  0x6a   :  { %v495_v11 = vpack.c.bf16 %v314_v9, %v312_v8  ;;  %v313_v13 = vld [vmem:[#allocation10 + $0x150] sm:$0xff]  ;;  %v316_v14 = vld [vmem:[#allocation10 + $0x168] sm:$0xff]  ;;  %v318_v15 = vld [vmem:[#allocation10 + $0x178] sm:$0xff]  ;;  %v438_v9 = vstv %s793_s8 }
  0x6b   :  { %470 = vmatpush1.bf16.msra.mxu1 %v469_v38  ;;  %v497_v16 = vpack.c.bf16 %v313_v13, %v311_v12  ;;  %v499_v17 = vpack.c.bf16 %v318_v15, %v316_v14  ;;  %v315_v18 = vld [vmem:[#allocation10 + $0x160] sm:$0xff]  ;;  %v317_v19 = vld [vmem:[#allocation10 + $0x170] sm:$0xff]  ;;  %v320_v20 = vld [vmem:[#allocation10 + $0x188] sm:$0xff] }
  0x6c   :  { %472 = vmatprep.subr.bf16.mxu1 %v471_v39  ;;  %v322_v21 = vld [vmem:[#allocation10 + $0x198] sm:$0xff]  ;;  %v501_v22 = vpack.c.bf16 %v317_v19, %v315_v18  ;;  %v319_v24 = vld [vmem:[#allocation10 + $0x180] sm:$0xff]  ;;  %v321_v25 = vld [vmem:[#allocation10 + $0x190] sm:$0xff] }
  0x6d   :  { %v503_v23 = vpack.c.bf16 %v322_v21, %v320_v20  ;;  %v324_v26 = vld [vmem:[#allocation10 + $0x1a8] sm:$0xff]  ;;  %v326_v27 = vld [vmem:[#allocation10 + $0x1b8] sm:$0xff]  ;;  %v505_v28 = vpack.c.bf16 %v321_v25, %v319_v24  ;;  %v323_v30 = vld [vmem:[#allocation10 + $0x1a0] sm:$0xff] }
  0x6e   :  { %v507_v29 = vpack.c.bf16 %v326_v27, %v324_v26  ;;  %v325_v31 = vld [vmem:[#allocation10 + $0x1b0] sm:$0xff]  ;;  %v328_v32 = vld [vmem:[#allocation10 + $0x1c8] sm:$0xff]  ;;  %v330_v33 = vld [vmem:[#allocation10 + $0x1d8] sm:$0xff] }
  0x6f   :  { %474 = vmatpush1.bf16.msra.mxu1 %v473_v44  ;;  %v509_v34 = vpack.c.bf16 %v325_v31, %v323_v30  ;;  %v511_v35 = vpack.c.bf16 %v330_v33, %v328_v32  ;;  %v327_v36 = vld [vmem:[#allocation10 + $0x1c0] sm:$0xff]  ;;  %v329_v37 = vld [vmem:[#allocation10 + $0x1d0] sm:$0xff]  ;;  %v332_v39 = vld [vmem:[#allocation10 + $0x1e8] sm:$0xff] }
  0x70   :  { %476 = vmatprep.subr.bf16.mxu1 %v475_v45  ;;  %v513_v38 = vpack.c.bf16 %v329_v37, %v327_v36  ;;  %v334_v40 = vld [vmem:[#allocation10 + $0x1f8] sm:$0xff]  ;;  %v331_v42 = vld [vmem:[#allocation10 + $0x1e0] sm:$0xff]  ;;  %v333_v43 = vld [vmem:[#allocation10 + $0x1f0] sm:$0xff]  ;;  %v257_v45 = vlaneseq }
  0x71   :  { %v515_v41 = vpack.c.bf16 %v334_v40, %v332_v39  ;;  %v517_v44 = vpack.c.bf16 %v333_v43, %v331_v42  ;;  %v255_v48 = vld [vmem:[%s789_s4] sm:$0x3] }
  0x72   :  { %v258_v46 = vshrl.u32 %v257_v45, 7  ;;  %v335_v58 = vld [vmem:[%s791_s6] sm:$0x3] }
  0x73   :  { %478 = vmatpush1.bf16.msra.mxu1 %v477_v50  ;;  %v420_v61 = vld [vmem:[%s792_s7] sm:$0x3] }
  0x74   :  { %480 = vmatprep.subr.bf16.mxu1 %v479_v51  ;;  %v259_v47 = vsub.s32 0, %v258_v46  ;;  %v263_v49 = vsub.s32 1, %v258_v46 }
  0x76   :  { %v260_v50 = vrot.slane %v255_v48, %v259_v47  ;;  %v264_v51 = vrot.slane %v255_v48, %v263_v49  ;;  %v340_v59 = vrot.slane %v335_v58, %v259_v47  ;;  %v344_v60 = vrot.slane %v335_v58, %v263_v49 }
  0x77   :  { %482 = vmatpush1.bf16.msra.mxu1 %v481_v56  ;;  %v425_v1 = vrot.slane %v420_v61, %v259_v47  ;;  %v429_v3 = vrot.slane %v420_v61, %v263_v49 }
  0x78   :  { %484 = vmatprep.subr.bf16.mxu1 %v483_v57 }
  0x7b   :  { %486 = vmatpush1.bf16.msra.mxu1 %v485_v62 }
  0x7c   :  { %488 = vmatprep.subr.bf16.mxu1 %v487_v63 }
  0x7f   :  { %490 = vmatpush1.bf16.msra.mxu1 %v489_v4 }
  0x80   :  { %492 = vmatprep.subr.bf16.mxu1 %v491_v5 }
  0x83   :  { %494 = vmatpush1.bf16.msra.mxu1 %v493_v10 }
  0x84   :  { %496 = vmatprep.subr.bf16.mxu1 %v495_v11 }
  0x87   :  { %498 = vmatpush1.bf16.msra.mxu1 %v497_v16 }
  0x88   :  { %500 = vmatprep.subr.bf16.mxu1 %v499_v17 }
  0x8b   :  { %502 = vmatpush1.bf16.msra.mxu1 %v501_v22 }
  0x8c   :  { %504 = vmatprep.subr.bf16.mxu1 %v503_v23 }
  0x8f   :  { %506 = vmatpush1.bf16.msra.mxu1 %v505_v28 }
  0x90   :  { %508 = vmatprep.subr.bf16.mxu1 %v507_v29 }
  0x93   :  { %510 = vmatpush1.bf16.msra.mxu1 %v509_v34 }
  0x94   :  { %512 = vmatprep.subr.bf16.mxu1 %v511_v35 }
  0x97   :  { %514 = vmatpush1.bf16.msra.mxu1 %v513_v38 }
  0x98   :  { %516 = vmatprep.subr.bf16.mxu1 %v515_v41 }
  0x9b   :  { %518 = vmatpush1.bf16.msra.mxu1 %v517_v44 }
 0x136   :  { %v250_v52 = vpop.f32.mrb[0].mxu0 }
 0x137   :  { %v267_v53 = vadd.f32 %v260_v50, %v250_v52  ;;  %v252_v54 = vpop.f32.mrb[1].mxu0 }
 0x138   :  { %v268_v55 = vadd.f32 %v264_v51, %v252_v54 }
 0x139   :  { %v269_v57 = vmax.f32 %v267_v53, 0.0 }
 0x13a   :  { %v270_v56 = vmax.f32 %v268_v55, 0.0 }
 0x13c   :  { %411 = vmatprep.mubr.f32.mxu1 %v270_v56 }
 0x13d   :  { %412 = vmatmul.mubr.f32.vlgmr.msra.gmra.mrb[0].mxu1 %v269_v57 }
 0x210   :  { %v413_v62 = vpop.f32.mrb[0].mxu1 }
 0x211   :  { %v414_v63 = vadd.f32 %v413_v62, %v340_v59  ;;  %v415_v0 = vpop.f32.mrb[1].mxu1 }
 0x212   :  { %v416_v2 = vadd.f32 %v415_v0, %v344_v60 }
 0x213   :  { %v418_v4 = vmax.f32 %v414_v63, 0.0 }
 0x214   :  { %v419_v5 = vmax.f32 %v416_v2, 0.0 }
 0x215   :  { %v432_v6 = vmul.f32 %v425_v1, %v418_v4 }
 0x216   :  { %v433_v7 = vmul.f32 %v429_v3, %v419_v5 }
 0x218   :  { %v434_v8 = vadd.f32 %v433_v7, %v432_v6 }
 0x21a   :  { %435 = vadd.xlane.f32.xlu0 %v434_v8 }
 0x2a7   :  { %v436_v10 = vpop.xlane.xlu0 %435 }
 0x2a8   :  { %v439_v11 = vadd.f32 %v438_v9, %v436_v10 }
 0x2aa   :  { %441 = vst.msk [vmem:[%s794_s9] sm:$0xff] %vm440_vm2, %v439_v11 }
 0x2ab   :  { %446 = vsyncpa [#allocation4], 1 }
 0x2ac   :  { %447 = vsyncpa [#allocation6], 1 }
 0x2ad   :  { %448 = vsyncpa [#allocation9], 1 }

</bundles_post_ra>
